<compile_context>
chip_gen: v6e
topology: v6e:2x2x1
jax: 0.10.0
libtpu: 0.0.40
codegen_flags: <defaults>
</compile_context>

<pallas_src>
from functools import partial

import jax
import jax.numpy as jnp
from jax import lax
from jax.experimental import pallas as pl
from jax.experimental.pallas import tpu as pltpu

# Static module configuration ("3 classifications and 3 regressions").
REG_INDS = (0, 1, 2)
CLASS_INDS = (3, 4, 5)

_SINGLE_PASS_MAX_ROWS = 65536   # rows handled by the one-shot kernel (~13 MiB VMEM worst case)
_BLOCK_ROWS = 65536             # row tile for the (rarely used) large-batch path


def _round_up(x, m):
    return ((x + m - 1) // m) * m


# --------------------------------------------------------------------------- kernels

def _single_pass_kernel(x_ref, o_ref, *, n_reg, n_out):
    """One-shot: batch-axis softmax per column, regression columns pass through."""
    x = x_ref[...].astype(jnp.float32)                    # [B, C]; f32 math in-kernel
    m = jnp.max(x, axis=0, keepdims=True)                 # [1, C] column max over batch
    e = jnp.exp(x - m)
    s = jnp.sum(e, axis=0, keepdims=True)                 # [1, C]
    sm = e * pl.reciprocal(s, approx=False)               # exact reciprocal (accuracy for free)
    col = lax.broadcasted_iota(jnp.int32, x.shape, 1)
    y = jnp.where(col >= n_reg, sm, x)                    # columns >= n_reg -> softmax
    o_ref[...] = y[:, :n_out].astype(o_ref.dtype)         # emit final [B, K] layout directly


def _stats_kernel(x_ref, m_ref, s_ref, *, n_rows, tile_rows):
    """Pass 1 of the large-batch path: running per-column max / sum-of-exp over row tiles."""
    t = pl.program_id(0)

    @pl.when(t == 0)
    def _init():
        m_ref[...] = jnp.full_like(m_ref, -jnp.inf)
        s_ref[...] = jnp.zeros_like(s_ref)

    x = x_ref[...].astype(jnp.float32)                    # [tb, C]
    row = lax.broadcasted_iota(jnp.int32, x.shape, 0) + t * tile_rows
    x = jnp.where(row < n_rows, x, -jnp.inf)              # mask rows past B (partial edge tile)

    m_prev = m_ref[...]
    m_new = jnp.maximum(m_prev, jnp.max(x, axis=0, keepdims=True))
    s_ref[...] = (s_ref[...] * jnp.exp(m_prev - m_new)
                  + jnp.sum(jnp.exp(x - m_new), axis=0, keepdims=True))
    m_ref[...] = m_new


def _normalize_kernel(x_ref, m_ref, s_ref, o_ref, *, n_reg, n_out):
    """Pass 2 of the large-batch path: normalize with global stats, select per column."""
    x = x_ref[...].astype(jnp.float32)                    # [tb, C]
    sm = jnp.exp(x - m_ref[...]) * pl.reciprocal(s_ref[...], approx=False)
    col = lax.broadcasted_iota(jnp.int32, x.shape, 1)
    y = jnp.where(col >= n_reg, sm, x)
    o_ref[...] = y[:, :n_out].astype(o_ref.dtype)         # partial edge tile masked by Pallas


# --------------------------------------------------------------------------- wrapper

def net_forward(preds, reg_inds=REG_INDS, class_inds=CLASS_INDS, *,
                single_pass_max_rows=_SINGLE_PASS_MAX_ROWS,
                block_rows=_BLOCK_ROWS):
    """Pallas forward: returns [B, len(reg_inds)+len(class_inds)] (== torch.stack(outputs).T)."""
    B, _ = preds.shape
    reg_inds = tuple(int(i) for i in reg_inds)
    class_inds = tuple(int(i) for i in class_inds)
    inds = reg_inds + class_inds
    K = len(inds)
    n_reg = len(reg_inds)

    # Fused column selection: the shipped config selects the contiguous prefix 0..K-1,
    # so `preds` goes straight into the kernel (no wrapper gather / transpose / cast).
    if inds == tuple(range(K)):
        src = preds
    else:
        src = jnp.take(preds, jnp.asarray(inds, dtype=jnp.int32), axis=1)
    C = src.shape[1]

    out_shape = jax.ShapeDtypeStruct((B, K), preds.dtype)
    params = pltpu.CompilerParams(
        dimension_semantics=("arbitrary",),
        vmem_limit_bytes=32 * 1024 * 1024,    # safe for v7x (64 MiB physical) as well as v5e/v6e
    )

    # Fast path: the whole batch fits in one resident tile -> single grid step,
    # single HBM read, no scratch, no cross-tile reduction.
    if B <= single_pass_max_rows:
        kern = partial(_single_pass_kernel, n_reg=n_reg, n_out=K)
        return pl.pallas_call(
            kern,
            out_shape=out_shape,
            grid=(1,),
            in_specs=[pl.BlockSpec((B, C), lambda i: (0, 0))],
            out_specs=pl.BlockSpec((B, K), lambda i: (0, 0)),
            compiler_params=params,
        )(src)

    # Large-batch path: two small pallas_calls (stats -> normalize).  No parked-output
    # index_map trick; the stats outputs use a constant block index (standard accumulator).
    tb = max(8, _round_up(min(block_rows, B), 8))
    nb = pl.cdiv(B, tb)

    stats_kern = partial(_stats_kernel, n_rows=B, tile_rows=tb)
    m, s = pl.pallas_call(
        stats_kern,
        out_shape=(jax.ShapeDtypeStruct((1, C), jnp.float32),
                   jax.ShapeDtypeStruct((1, C), jnp.float32)),
        grid=(nb,),
        in_specs=[pl.BlockSpec((tb, C), lambda t: (t, 0))],
        out_specs=(pl.BlockSpec((1, C), lambda t: (0, 0)),
                   pl.BlockSpec((1, C), lambda t: (0, 0))),
        compiler_params=params,
    )(src)

    norm_kern = partial(_normalize_kernel, n_reg=n_reg, n_out=K)
    return pl.pallas_call(
        norm_kern,
        out_shape=out_shape,
        grid=(nb,),
        in_specs=[pl.BlockSpec((tb, C), lambda t: (t, 0)),
                  pl.BlockSpec((1, C), lambda t: (0, 0)),
                  pl.BlockSpec((1, C), lambda t: (0, 0))],
        out_specs=pl.BlockSpec((tb, K), lambda t: (t, 0)),
        compiler_params=params,
    )(src, m, s)


def net_forward_ref(preds, reg_inds=REG_INDS, class_inds=CLASS_INDS):
    """Pure-JAX reference mirroring the PyTorch forward."""
    outputs = [preds[:, i] for i in reg_inds]
    outputs += [jax.nn.softmax(preds[:, i], axis=0) for i in class_inds]
    return jnp.stack(outputs).T


# --------------------------------------------------------------------------- tests

if __name__ == "__main__":
    T = 8  # MPNN task-prediction width (>= max index used)

    # Shipped shape: small batch, fast (single-pass) path.
    B = 8
    preds = jax.random.normal(jax.random.PRNGKey(0), (B, T), dtype=jnp.float32)
    out = jax.block_until_ready(net_forward(preds))
    ref = net_forward_ref(preds)
    assert out.shape == (B, len(REG_INDS) + len(CLASS_INDS))
    assert out.dtype == preds.dtype
    assert jnp.allclose(out, ref, rtol=1e-4, atol=1e-6), "mismatch (fast path, B=8)"

    # Batch not a multiple of 8 (sublane handling), fast path.
    B2 = 37
    preds2 = jax.random.normal(jax.random.PRNGKey(1), (B2, T), dtype=jnp.float32)
    out2 = jax.block_until_ready(net_forward(preds2))
    ref2 = net_forward_ref(preds2)
    assert jnp.allclose(out2, ref2, rtol=1e-4, atol=1e-6), "mismatch (fast path, B=37)"

    # Force the large-batch path (two pallas_calls, cross-tile softmax, partial edge tile).
    B3 = 300
    preds3 = jax.random.normal(jax.random.PRNGKey(2), (B3, T), dtype=jnp.float32)
    out3 = jax.block_until_ready(
        net_forward(preds3, single_pass_max_rows=0, block_rows=128))
    ref3 = net_forward_ref(preds3)
    assert jnp.allclose(out3, ref3, rtol=1e-4, atol=1e-6), "mismatch (tiled path, B=300)"

    # Non-contiguous column selection exercises the wrapper gather branch.
    out4 = jax.block_until_ready(net_forward(preds2, reg_inds=(1, 3, 5), class_inds=(0, 2, 4)))
    ref4 = net_forward_ref(preds2, reg_inds=(1, 3, 5), class_inds=(0, 2, 4))
    assert jnp.allclose(out4, ref4, rtol=1e-4, atol=1e-6), "mismatch (gathered columns)"

    # bf16 I/O (kernel math stays f32; HBM traffic halves).
    preds5 = preds.astype(jnp.bfloat16)
    out5 = jax.block_until_ready(net_forward(preds5))
    ref5 = net_forward_ref(preds5.astype(jnp.float32)).astype(jnp.bfloat16)
    assert out5.dtype == jnp.bfloat16
    assert jnp.allclose(out5.astype(jnp.float32), ref5.astype(jnp.float32),
                        rtol=2e-2, atol=2e-2), "mismatch (bf16 I/O)"

    print("KERNEL_OK")
</pallas_src>

<mosaic_0001>
module attributes {stable_mosaic.version = 11 : i64} {
  func.func @_single_pass_kernel(%arg0: i32, %arg1: memref<8x8xf32, #tpu.memory_space<vmem>>, %arg2: memref<8x6xf32, #tpu.memory_space<vmem>>) attributes {dimension_semantics = [#tpu.dimension_semantics<arbitrary>], iteration_bounds = array<i64: 1>, scalar_prefetch = 0 : i64, scratch_operands = 0 : i64, tpu.core_type = #tpu.core_type<tc>, window_params = [{pipeline_mode = #tpu.pipeline_mode<synchronous>, transform_indices = @transform_0, window_bounds = array<i64: 8, 8>}, {pipeline_mode = #tpu.pipeline_mode<synchronous>, transform_indices = @transform_1, window_bounds = array<i64: 8, 6>}]} {
    %c0 = arith.constant 0 : index
    %c0_0 = arith.constant 0 : index
    %0 = vector.load %arg1[%c0, %c0_0] : memref<8x8xf32, #tpu.memory_space<vmem>>, vector<8x8xf32>
    %cst = arith.constant dense<0xFF800000> : vector<8xf32>
    %1 = vector.multi_reduction <maximumf>, %0, %cst [0] : vector<8x8xf32> to vector<8xf32>
    %2 = vector.shape_cast %1 : vector<8xf32> to vector<1x8xf32>
    %3 = vector.broadcast %2 : vector<1x8xf32> to vector<8x8xf32>
    %4 = arith.subf %0, %3 : vector<8x8xf32>
    %5 = math.exp %4 : vector<8x8xf32>
    %cst_1 = arith.constant dense<0.000000e+00> : vector<8xf32>
    %6 = vector.multi_reduction <add>, %5, %cst_1 [0] : vector<8x8xf32> to vector<8xf32>
    %7 = vector.shape_cast %6 : vector<8xf32> to vector<1x8xf32>
    %8 = tpu.reciprocal %7 : vector<1x8xf32> -> vector<1x8xf32>
    %9 = vector.broadcast %8 : vector<1x8xf32> to vector<8x8xf32>
    %10 = arith.mulf %5, %9 : vector<8x8xf32>
    %11 = tpu.iota {dimensions = array<i32: 1>} : vector<8x8xi32>
    %c3_i32 = arith.constant 3 : i32
    %12 = vector.broadcast %c3_i32 : i32 to vector<8x8xi32>
    %13 = arith.cmpi sge, %11, %12 : vector<8x8xi32>
    %14 = arith.select %13, %10, %0 : vector<8x8xi1>, vector<8x8xf32>
    %15 = vector.extract_strided_slice %14 {offsets = [0, 0], sizes = [8, 6], strides = [1, 1]} : vector<8x8xf32> to vector<8x6xf32>
    %c0_2 = arith.constant 0 : index
    %c0_3 = arith.constant 0 : index
    %16 = vector.load %arg2[%c0_2, %c0_3] : memref<8x6xf32, #tpu.memory_space<vmem>>, vector<8x6xf32>
    tpu.vector_store %arg2[%c0_2, %c0_3], %15 {strides = array<i32>} : memref<8x6xf32, #tpu.memory_space<vmem>>, vector<8x6xf32>,
    return
  }
  func.func @transform_0(%arg0: i32) -> (i32, i32) {
    %c0_i32 = arith.constant 0 : i32
    %c0_i32_0 = arith.constant 0 : i32
    %c0_i32_1 = arith.constant 0 : i32
    return %c0_i32, %c0_i32_0 : i32, i32
  }
  func.func @transform_1(%arg0: i32) -> (i32, i32) {
    %c0_i32 = arith.constant 0 : i32
    %c0_i32_0 = arith.constant 0 : i32
    %c0_i32_1 = arith.constant 0 : i32
    return %c0_i32, %c0_i32_0 : i32, i32
  }
}

</mosaic_0001>

<bundles_post_ra>
// kernel: tpu_custom_call.1
= control target key start
LH: loop header
LB: loop body
LE: loop exit
PB: predicated region body
PF: predicated region fallthrough
CT: control target
= control target key end

     0   :  { %6 = vsyncpa [#allocation3], 0  ;;  %s131_s0 = inlined_call_operand.hbm [shape: f32[8,8], index: 0, kind: input, shape index: {}]   ;;  %s132_s1 = inlined_call_operand.hbm [shape: f32[8,6], index: 1, kind: output, shape index: {}]  }
   0x1   :  { %7 = vsyncpa [#allocation4], 0  ;;  %s113_s6 = smov [#allocation2]  }
   0x2   :  { %s14_s7 = sshll.u32 %s113_s6, 4  ;;  %s15_s7 = int_to_ptr.vmem [resolvable:$true] %s14_s7 }
   0x3   :  { %s77_s8 = scalar_lea.vmem %s15_s7, 128  ;;  %p82_p1 = scmp.lt.s32.totalorder %s15_s7, %s15_s7 }
   0x4   :  { %p78_p0 = scmp.ne.s32.totalorder %s15_s7, %s77_s8  ;;  %p83_p2 = scmp.lt.s32.totalorder %s77_s8, %s77_s8 }
   0x6   :  { %p84_p3 = por %p83_p2, %p82_p1 }
   0x8   :  { %p85_p4 = pnand %p84_p3, %p78_p0 }
   0xa   :  { %88 = shalt.err (!%p85_p4)
}
   0xb   :  { %17 = dma.hbm_to_vmem [thread:$0]  %s131_s0, 128, %s15_s7, [#allocation3]  }
   0xc   :  { %109 = dma.done.wait [#allocation3], 128  }
   0xd   :  { %110 = vsyncadd [#allocation3], 4294967168  ;;  %vm22_vm0 = vcmask 64512   ;;  %v21_v0 = vld [vmem:[#allocation2] sm:$0xff]  ;;  %v42_v18 = vlaneseq  ;;  %s114_s0 = smov [#allocation5]   ;;  %vm46_vm2 = vcmask 48128  }
   0xe   :  { %v23_v1 = vsel %vm22_vm0, %v21_v0, -inf  ;;  %s54_s11 = sshll.u32 %s114_s0, 4  ;;  %s55_s11 = int_to_ptr.vmem [resolvable:$true] %s54_s11 }
   0xf   :  { %v24_v2 = vrot.slane %v23_v1, 4  ;;  %v43_v19 = vand.u32 127, %v42_v18  ;;  %s89_s12 = scalar_lea.vmem %s55_s11, 128  ;;  %p94_p6 = scmp.lt.s32.totalorder %s55_s11, %s55_s11 }
  0x10   :  { %p90_p5 = scmp.ne.s32.totalorder %s55_s11, %s89_s12  ;;  %p95_p7 = scmp.lt.s32.totalorder %s89_s12, %s89_s12 }
  0x11   :  { %v25_v3 = vmax.f32 %v23_v1, %v24_v2  ;;  %vm44_vm1 = vcmp.ge.s32.totalorder %v43_v19, 3 }
  0x12   :  { %p96_p8 = por %p95_p7, %p94_p6 }
  0x13   :  { %v26_v4 = vrot.slane %v25_v3, 2 }
  0x14   :  { %p97_p9 = pnand %p96_p8, %p90_p5 }
  0x15   :  { %v27_v5 = vmax.f32 %v25_v3, %v26_v4 }
  0x17   :  { %v28_v6 = vrot.slane %v27_v5, 1 }
  0x19   :  { %v29_v7 = vmax.f32 %v27_v5, %v28_v6 }
  0x1b   :  { %v30_v8 = vsub.f32 %v21_v0, %v29_v7 }
  0x1d   :  { %v31_v9 = vmul.f32 1.442695, %v30_v8 }
  0x1f   :  { %65 = vpow2.f32 %v31_v9 }
  0x2c   :  { %v66_v10 = vpop.eup %65 }
  0x2d   :  { %v33_v11 = vsel %vm22_vm0, %v66_v10, 0.0 }
  0x2e   :  { %v34_v12 = vrot.slane %v33_v11, 4 }
  0x30   :  { %v35_v13 = vadd.f32 %v34_v12, %v33_v11 }
  0x32   :  { %v36_v14 = vrot.slane %v35_v13, 2 }
  0x34   :  { %v37_v15 = vadd.f32 %v36_v14, %v35_v13 }
  0x36   :  { %v38_v16 = vrot.slane %v37_v15, 1 }
  0x38   :  { %v39_v17 = vadd.f32 %v38_v16, %v37_v15 }
  0x3a   :  { %67 = vrcp.f32 %v39_v17 }
  0x47   :  { %v68_v20 = vpop.eup %67 }
  0x48   :  { %v41_v21 = vmul.f32 %v68_v20, %v66_v10 }
  0x4a   :  { %v45_v22 = vsel %vm44_vm1, %v41_v21, %v21_v0 }
  0x4b   :  { %47 = vst.msk [vmem:[#allocation5] sm:$0xff] %vm46_vm2, %v45_v22 }
  0x4c   :  { %100 = shalt.err (!%p97_p9)
}
  0x4d   :  { %57 = dma.vmem_to_hbm [thread:$0]  %s55_s11, 128, %s132_s1, [#allocation4]  }
  0x4e   :  { %111 = dma.done.wait [#allocation4], 128  }
  0x4f   :  { %112 = vsyncadd [#allocation4], 4294967168 }
  0x50   :  { %61 = vsyncpa [#allocation3], 1 }
  0x51   :  { %62 = vsyncpa [#allocation4], 1 }

</bundles_post_ra>
